<compile_context>
chip_gen: v6e
topology: v6e:2x2x1
jax: 0.10.0
libtpu: 0.0.40
codegen_flags: <defaults>
</compile_context>

<pallas_src>
import functools

import jax
import jax.numpy as jnp
from jax.experimental import pallas as pl
from jax.experimental.pallas import tpu as pltpu

NUM_FEATURES = 50
NUM_CLASSES = 4
HIDDEN = (100, 250, 128)

# MXU / vreg friendly padded dims (zero padding).
F_PAD = 64      # 50  -> 64   (x / w1 contraction dim)
H1_PAD = 128    # 100 -> 128
H2_PAD = 256    # 250 -> 256
H3_PAD = 128    # 128 already aligned


def _mlp_kernel(x_ref,
                w1_ref, b1_ref,
                w2_ref, b2_ref,
                w3_ref, b3_ref,
                w4_ref, b4_ref,
                o_ref):
    """Fused 4-layer MLP on one (TILE_B, F_PAD) batch tile.

    bf16 MXU operands with f32 accumulation; bias add + ReLU stay f32 on the
    VPU.  Dropout is identity at inference time.
    """
    x = x_ref[...]                                                     # bf16 (tb, 64)

    h1 = jnp.dot(x, w1_ref[...], preferred_element_type=jnp.float32) + b1_ref[...]
    h1 = jnp.maximum(h1, 0.0).astype(jnp.bfloat16)                     # (tb, 128)

    h2 = jnp.dot(h1, w2_ref[...], preferred_element_type=jnp.float32) + b2_ref[...]
    h2 = jnp.maximum(h2, 0.0).astype(jnp.bfloat16)                     # (tb, 256)

    h3 = jnp.dot(h2, w3_ref[...], preferred_element_type=jnp.float32) + b3_ref[...]
    h3 = jnp.maximum(h3, 0.0).astype(jnp.bfloat16)                     # (tb, 128)

    logits = jnp.dot(h3, w4_ref[...], preferred_element_type=jnp.float32) + b4_ref[...]
    o_ref[...] = logits.astype(o_ref.dtype)                            # (tb, 4)


def _pad_to(a, shape):
    return jnp.pad(a, [(0, t - s) for s, t in zip(a.shape, shape)])


def _prepare_params(params):
    """Zero-pad params to MXU-aligned shapes; cast matmul weights to bf16."""
    w1 = _pad_to(params["w1"], (F_PAD, H1_PAD)).astype(jnp.bfloat16)
    b1 = _pad_to(params["b1"], (1, H1_PAD)).astype(jnp.float32)
    w2 = _pad_to(params["w2"], (H1_PAD, H2_PAD)).astype(jnp.bfloat16)
    b2 = _pad_to(params["b2"], (1, H2_PAD)).astype(jnp.float32)
    w3 = _pad_to(params["w3"], (H2_PAD, H3_PAD)).astype(jnp.bfloat16)
    b3 = _pad_to(params["b3"], (1, H3_PAD)).astype(jnp.float32)
    w4 = params["w4"].astype(jnp.bfloat16)          # (128, 4): K already aligned
    b4 = params["b4"].astype(jnp.float32)
    return (w1, b1, w2, b2, w3, b3, w4, b4)


def _x_map(i):
    return (i, 0)


def _const_map(i):
    return (0, 0)


@functools.partial(jax.jit, static_argnames=("tile_b",))
def tps05_forward(x, params, *, tile_b=2048):
    """x: (B, NUM_FEATURES) float32 -> (B, NUM_CLASSES) float32 logits."""
    B = x.shape[0]

    # Row tile: multiple of 8 (sublane), capped by the (aligned) batch size.
    # tile_b=2048 amortizes the ~0.35us per-grid-step overhead while keeping
    # the f32 intermediates (~10 MiB live) within the 32 MiB scoped VMEM set
    # below on every chip generation.
    b_aligned = ((B + 7) // 8) * 8
    tb = min(tile_b, b_aligned)
    grid_b = pl.cdiv(b_aligned, tb)
    b_padded = grid_b * tb

    # Pad batch rows + feature lanes with zeros; bf16 activations halve the
    # dominant HBM->VMEM DMA traffic (accumulation stays f32 in-kernel).
    xp = jnp.zeros((b_padded, F_PAD), jnp.bfloat16).at[:B, :NUM_FEATURES].set(
        x.astype(jnp.bfloat16))

    prepped = _prepare_params(params)

    # Weights/biases: full-shape blocks, constant index_map -> VMEM-resident
    # across all grid steps (only re-DMA'd when the block index changes).
    const_specs = [pl.BlockSpec(p.shape, _const_map) for p in prepped]

    out = pl.pallas_call(
        _mlp_kernel,
        out_shape=jax.ShapeDtypeStruct((b_padded, NUM_CLASSES), jnp.float32),
        grid=(grid_b,),
        in_specs=[pl.BlockSpec((tb, F_PAD), _x_map)] + const_specs,
        out_specs=pl.BlockSpec((tb, NUM_CLASSES), _x_map),
        compiler_params=pltpu.CompilerParams(
            dimension_semantics=("parallel",),        # 2x TC sharding on v7x
            vmem_limit_bytes=32 * 1024 * 1024,        # safe on v5e/v6e/v7x
        ),
    )(xp, *prepped)

    return out[:B]


def init_params(key):
    """Deterministic init matching the PyTorch module's shapes.

    nn.Linear(in, out): weight (out, in), bias (out,). We store the transposed
    weight (in, out) so the kernel computes x @ W directly; biases as (1, out).
    """
    dims = [NUM_FEATURES, *HIDDEN, NUM_CLASSES]   # 50 -> 100 -> 250 -> 128 -> 4
    params = {}
    for i in range(4):
        fan_in, fan_out = dims[i], dims[i + 1]
        key, kw, kb = jax.random.split(key, 3)
        bound = 1.0 / jnp.sqrt(fan_in)            # PyTorch default U(-1/sqrt(fan_in), ...)
        params[f"w{i+1}"] = jax.random.uniform(
            kw, (fan_in, fan_out), jnp.float32, -bound, bound)
        params[f"b{i+1}"] = jax.random.uniform(
            kb, (1, fan_out), jnp.float32, -bound, bound)
    return params


def _reference_forward(x, params):
    h = jnp.maximum(x @ params["w1"] + params["b1"], 0.0)
    h = jnp.maximum(h @ params["w2"] + params["b2"], 0.0)
    h = jnp.maximum(h @ params["w3"] + params["b3"], 0.0)
    return h @ params["w4"] + params["b4"]


if __name__ == "__main__":
    key = jax.random.PRNGKey(0)
    key, kx = jax.random.split(key)

    B = 8
    x = jax.random.normal(kx, (B, NUM_FEATURES), jnp.float32)
    params = init_params(key)

    # TODO(synk): nn.Dropout(p=0.3) is identity at inference; training-mode
    # dropout masking is intentionally not implemented.
    out = tps05_forward(x, params)
    out = jax.block_until_ready(out)

    ref = _reference_forward(x, params)          # pure f32 reference
    assert out.shape == (B, NUM_CLASSES)
    # bf16 matmul operands (f32 accumulate) -> allow ~1e-2-level deviation.
    assert jnp.allclose(out, ref, atol=5e-2, rtol=5e-2), (
        f"max abs err = {jnp.max(jnp.abs(out - ref))}")

    print("KERNEL_OK")
</pallas_src>

<mosaic_0001>
module attributes {stable_mosaic.version = 11 : i64} {
  func.func @_mlp_kernel(%arg0: i32, %arg1: memref<8x64xbf16, #tpu.memory_space<vmem>>, %arg2: memref<64x128xbf16, #tpu.memory_space<vmem>>, %arg3: memref<1x128xf32, #tpu.memory_space<vmem>>, %arg4: memref<128x256xbf16, #tpu.memory_space<vmem>>, %arg5: memref<1x256xf32, #tpu.memory_space<vmem>>, %arg6: memref<256x128xbf16, #tpu.memory_space<vmem>>, %arg7: memref<1x128xf32, #tpu.memory_space<vmem>>, %arg8: memref<128x4xbf16, #tpu.memory_space<vmem>>, %arg9: memref<1x4xf32, #tpu.memory_space<vmem>>, %arg10: memref<8x4xf32, #tpu.memory_space<vmem>>) attributes {dimension_semantics = [#tpu.dimension_semantics<parallel>], iteration_bounds = array<i64: 1>, scalar_prefetch = 0 : i64, scratch_operands = 0 : i64, tpu.core_type = #tpu.core_type<tc>, window_params = [{transform_indices = @transform_0, window_bounds = array<i64: 8, 64>}, {pipeline_mode = #tpu.pipeline_mode<synchronous>, transform_indices = @transform_1, window_bounds = array<i64: 64, 128>}, {pipeline_mode = #tpu.pipeline_mode<synchronous>, transform_indices = @transform_2, window_bounds = array<i64: 1, 128>}, {pipeline_mode = #tpu.pipeline_mode<synchronous>, transform_indices = @transform_3, window_bounds = array<i64: 128, 256>}, {pipeline_mode = #tpu.pipeline_mode<synchronous>, transform_indices = @transform_4, window_bounds = array<i64: 1, 256>}, {pipeline_mode = #tpu.pipeline_mode<synchronous>, transform_indices = @transform_5, window_bounds = array<i64: 256, 128>}, {pipeline_mode = #tpu.pipeline_mode<synchronous>, transform_indices = @transform_6, window_bounds = array<i64: 1, 128>}, {pipeline_mode = #tpu.pipeline_mode<synchronous>, transform_indices = @transform_7, window_bounds = array<i64: 128, 4>}, {pipeline_mode = #tpu.pipeline_mode<synchronous>, transform_indices = @transform_8, window_bounds = array<i64: 1, 4>}, {transform_indices = @transform_9, window_bounds = array<i64: 8, 4>}]} {
    %c0 = arith.constant 0 : index
    %c0_0 = arith.constant 0 : index
    %0 = vector.load %arg1[%c0, %c0_0] : memref<8x64xbf16, #tpu.memory_space<vmem>>, vector<8x64xbf16>
    %c0_1 = arith.constant 0 : index
    %c0_2 = arith.constant 0 : index
    %1 = vector.load %arg2[%c0_1, %c0_2] : memref<64x128xbf16, #tpu.memory_space<vmem>>, vector<64x128xbf16>
    %cst = arith.constant dense<0.000000e+00> : vector<8x128xf32>
    %2 = tpu.matmul %0, %1, %cst {dimension_numbers = #tpu.dot_dimension_numbers<[1], [0], [0], [1], [0, 0, 1, 1], [], []>} : vector<8x64xbf16>, vector<64x128xbf16>, vector<8x128xf32> -> vector<8x128xf32>
    %c0_3 = arith.constant 0 : index
    %c0_4 = arith.constant 0 : index
    %3 = vector.load %arg3[%c0_3, %c0_4] : memref<1x128xf32, #tpu.memory_space<vmem>>, vector<1x128xf32>
    %4 = vector.broadcast %3 : vector<1x128xf32> to vector<8x128xf32>
    %5 = arith.addf %2, %4 : vector<8x128xf32>
    %cst_5 = arith.constant 0.000000e+00 : f32
    %6 = vector.broadcast %cst_5 : f32 to vector<8x128xf32>
    %7 = arith.maximumf %5, %6 : vector<8x128xf32>
    %8 = arith.truncf %7 : vector<8x128xf32> to vector<8x128xbf16>
    %c0_6 = arith.constant 0 : index
    %c0_7 = arith.constant 0 : index
    %9 = vector.load %arg4[%c0_6, %c0_7] : memref<128x256xbf16, #tpu.memory_space<vmem>>, vector<128x256xbf16>
    %cst_8 = arith.constant dense<0.000000e+00> : vector<8x256xf32>
    %10 = tpu.matmul %8, %9, %cst_8 {dimension_numbers = #tpu.dot_dimension_numbers<[1], [0], [0], [1], [0, 0, 1, 1], [], []>} : vector<8x128xbf16>, vector<128x256xbf16>, vector<8x256xf32> -> vector<8x256xf32>
    %c0_9 = arith.constant 0 : index
    %c0_10 = arith.constant 0 : index
    %11 = vector.load %arg5[%c0_9, %c0_10] : memref<1x256xf32, #tpu.memory_space<vmem>>, vector<1x256xf32>
    %12 = vector.broadcast %11 : vector<1x256xf32> to vector<8x256xf32>
    %13 = arith.addf %10, %12 : vector<8x256xf32>
    %cst_11 = arith.constant 0.000000e+00 : f32
    %14 = vector.broadcast %cst_11 : f32 to vector<8x256xf32>
    %15 = arith.maximumf %13, %14 : vector<8x256xf32>
    %16 = arith.truncf %15 : vector<8x256xf32> to vector<8x256xbf16>
    %c0_12 = arith.constant 0 : index
    %c0_13 = arith.constant 0 : index
    %17 = vector.load %arg6[%c0_12, %c0_13] : memref<256x128xbf16, #tpu.memory_space<vmem>>, vector<256x128xbf16>
    %cst_14 = arith.constant dense<0.000000e+00> : vector<8x128xf32>
    %18 = tpu.matmul %16, %17, %cst_14 {dimension_numbers = #tpu.dot_dimension_numbers<[1], [0], [0], [1], [0, 0, 1, 1], [], []>} : vector<8x256xbf16>, vector<256x128xbf16>, vector<8x128xf32> -> vector<8x128xf32>
    %c0_15 = arith.constant 0 : index
    %c0_16 = arith.constant 0 : index
    %19 = vector.load %arg7[%c0_15, %c0_16] : memref<1x128xf32, #tpu.memory_space<vmem>>, vector<1x128xf32>
    %20 = vector.broadcast %19 : vector<1x128xf32> to vector<8x128xf32>
    %21 = arith.addf %18, %20 : vector<8x128xf32>
    %cst_17 = arith.constant 0.000000e+00 : f32
    %22 = vector.broadcast %cst_17 : f32 to vector<8x128xf32>
    %23 = arith.maximumf %21, %22 : vector<8x128xf32>
    %24 = arith.truncf %23 : vector<8x128xf32> to vector<8x128xbf16>
    %c0_18 = arith.constant 0 : index
    %c0_19 = arith.constant 0 : index
    %25 = vector.load %arg8[%c0_18, %c0_19] : memref<128x4xbf16, #tpu.memory_space<vmem>>, vector<128x4xbf16>
    %cst_20 = arith.constant dense<0.000000e+00> : vector<8x4xf32>
    %26 = tpu.matmul %24, %25, %cst_20 {dimension_numbers = #tpu.dot_dimension_numbers<[1], [0], [0], [1], [0, 0, 1, 1], [], []>} : vector<8x128xbf16>, vector<128x4xbf16>, vector<8x4xf32> -> vector<8x4xf32>
    %c0_21 = arith.constant 0 : index
    %c0_22 = arith.constant 0 : index
    %27 = vector.load %arg9[%c0_21, %c0_22] : memref<1x4xf32, #tpu.memory_space<vmem>>, vector<1x4xf32>
    %28 = vector.broadcast %27 : vector<1x4xf32> to vector<8x4xf32>
    %29 = arith.addf %26, %28 : vector<8x4xf32>
    %c0_23 = arith.constant 0 : index
    %c0_24 = arith.constant 0 : index
    %30 = vector.load %arg10[%c0_23, %c0_24] : memref<8x4xf32, #tpu.memory_space<vmem>>, vector<8x4xf32>
    tpu.vector_store %arg10[%c0_23, %c0_24], %29 {strides = array<i32>} : memref<8x4xf32, #tpu.memory_space<vmem>>, vector<8x4xf32>,
    return
  }
  func.func @transform_0(%arg0: i32) -> (i32, i32) {
    %c0_i32 = arith.constant 0 : i32
    %c0_i32_0 = arith.constant 0 : i32
    return %arg0, %c0_i32 : i32, i32
  }
  func.func @transform_1(%arg0: i32) -> (i32, i32) {
    %c0_i32 = arith.constant 0 : i32
    %c0_i32_0 = arith.constant 0 : i32
    %c0_i32_1 = arith.constant 0 : i32
    return %c0_i32, %c0_i32_0 : i32, i32
  }
  func.func @transform_2(%arg0: i32) -> (i32, i32) {
    %c0_i32 = arith.constant 0 : i32
    %c0_i32_0 = arith.constant 0 : i32
    %c0_i32_1 = arith.constant 0 : i32
    return %c0_i32, %c0_i32_0 : i32, i32
  }
  func.func @transform_3(%arg0: i32) -> (i32, i32) {
    %c0_i32 = arith.constant 0 : i32
    %c0_i32_0 = arith.constant 0 : i32
    %c0_i32_1 = arith.constant 0 : i32
    return %c0_i32, %c0_i32_0 : i32, i32
  }
  func.func @transform_4(%arg0: i32) -> (i32, i32) {
    %c0_i32 = arith.constant 0 : i32
    %c0_i32_0 = arith.constant 0 : i32
    %c0_i32_1 = arith.constant 0 : i32
    return %c0_i32, %c0_i32_0 : i32, i32
  }
  func.func @transform_5(%arg0: i32) -> (i32, i32) {
    %c0_i32 = arith.constant 0 : i32
    %c0_i32_0 = arith.constant 0 : i32
    %c0_i32_1 = arith.constant 0 : i32
    return %c0_i32, %c0_i32_0 : i32, i32
  }
  func.func @transform_6(%arg0: i32) -> (i32, i32) {
    %c0_i32 = arith.constant 0 : i32
    %c0_i32_0 = arith.constant 0 : i32
    %c0_i32_1 = arith.constant 0 : i32
    return %c0_i32, %c0_i32_0 : i32, i32
  }
  func.func @transform_7(%arg0: i32) -> (i32, i32) {
    %c0_i32 = arith.constant 0 : i32
    %c0_i32_0 = arith.constant 0 : i32
    %c0_i32_1 = arith.constant 0 : i32
    return %c0_i32, %c0_i32_0 : i32, i32
  }
  func.func @transform_8(%arg0: i32) -> (i32, i32) {
    %c0_i32 = arith.constant 0 : i32
    %c0_i32_0 = arith.constant 0 : i32
    %c0_i32_1 = arith.constant 0 : i32
    return %c0_i32, %c0_i32_0 : i32, i32
  }
  func.func @transform_9(%arg0: i32) -> (i32, i32) {
    %c0_i32 = arith.constant 0 : i32
    %c0_i32_0 = arith.constant 0 : i32
    return %arg0, %c0_i32 : i32, i32
  }
}

</mosaic_0001>

<bundles_post_ra>
// kernel: tps05_forward.1
= control target key start
LH: loop header
LB: loop body
LE: loop exit
PB: predicated region body
PF: predicated region fallthrough
CT: control target
= control target key end

     0   :  { %v737_v0 = vmov 0.0   ;;  %vm738_vm0 = vmmov 0   ;;  %vm73_vm1 = vcmask 523264   ;;  %v739_v22 = vmov 0   ;;  %s956_s1 = inlined_call_operand.vmem [shape: bf16[64,128], index: 1, kind: input, shape index: {}]   ;;  %s957_s3 = inlined_call_operand.vmem [shape: bf16[128,256], index: 3, kind: input, shape index: {}]   ;;  %s958_s0 = inlined_call_operand.vmem [shape: bf16[8,64], index: 0, kind: input, shape index: {}]   ;;  %s959_s5 = inlined_call_operand.vmem [shape: bf16[256,128], index: 5, kind: input, shape index: {}]   ;;  %s960_s2 = inlined_call_operand.vmem [shape: f32[1,128], index: 2, kind: input, shape index: {}]   ;;  %s961_s7 = inlined_call_operand.vmem [shape: bf16[128,4], index: 7, kind: input, shape index: {}]   ;;  %s962_s4 = inlined_call_operand.vmem [shape: f32[1,256], index: 4, kind: input, shape index: {}]   ;;  %s963_s6 = inlined_call_operand.vmem [shape: f32[1,128], index: 6, kind: input, shape index: {}]   ;;  %s964_s8 = inlined_call_operand.vmem [shape: f32[1,4], index: 8, kind: input, shape index: {}]   ;;  %s965_s9 = inlined_call_operand.vmem [shape: f32[8,4], index: 9, kind: output, shape index: {}]  }
   0x1   :  { %650 = vmatprep.subr.bf16.mxu0 %v737_v0  ;;  %v685_v1 = vld [vmem:[%s956_s1 + $0x18] sm:$0xff]   ;;  %658 = vmatprep.mubr.msk.bf16.mxu0 %vm738_vm0, %v737_v0  ;;  %v686_v2 = vld [vmem:[%s956_s1 + $0x10] sm:$0xff]   ;;  %v687_v5 = vld [vmem:[%s956_s1 + $0x8] sm:$0xff]   ;;  %v137_v52 = vlaneseq  ;;  %vm560_vm2 = vcmask 31744  }
   0x2   :  { %651 = vmatpush3.bf16.msra.mxu0 %v685_v1  ;;  %v689_v3 = vld [vmem:[%s957_s3 + $0x74] ss:$8 sps:$4 sm:$0xff]   ;;  %v691_v4 = vld [vmem:[%s957_s3 + $0x70] ss:$8 sps:$4 sm:$0xff]   ;;  %v692_v6 = vld [vmem:[%s957_s3 + $0x64] ss:$8 sps:$4 sm:$0xff]   ;;  %259 = vmatprep.mubr.bf16.mxu1 %v739_v22 }
   0x3   :  { %652 = vmatprep.subr.bf16.mxu0 %v737_v0  ;;  %227 = vmatprep.subr.bf16.mxu1 %v689_v3  ;;  %v694_v7 = vld [vmem:[%s957_s3 + $0x60] ss:$8 sps:$4 sm:$0xff]   ;;  %v695_v8 = vld [vmem:[%s957_s3 + $0x54] ss:$8 sps:$4 sm:$0xff]   ;;  %v697_v10 = vld [vmem:[%s957_s3 + $0x50] ss:$8 sps:$4 sm:$0xff]  }
   0x4   :  { %228 = vmatpush1.bf16.msra.mxu1 %v691_v4  ;;  %v688_v9 = vld [vmem:[%s956_s1] sm:$0xff]   ;;  %v701_v14 = vld [vmem:[%s957_s3 + $0x34] ss:$8 sps:$4 sm:$0xff]   ;;  %v703_v15 = vld [vmem:[%s957_s3 + $0x30] ss:$8 sps:$4 sm:$0xff]   ;;  %v138_v53 = vshrl.u32 %v137_v52, 7 }
   0x5   :  { %229 = vmatprep.subr.bf16.mxu1 %v692_v6  ;;  %v698_v11 = vld [vmem:[%s957_s3 + $0x44] ss:$8 sps:$4 sm:$0xff]   ;;  %v33_v12 = vld [vmem:[%s958_s0] sm:$0xf]  ;;  %v707_v18 = vld [vmem:[%s957_s3 + $0x14] ss:$8 sps:$4 sm:$0xff]  }
   0x6   :  { %653 = vmatpush3.bf16.msra.mxu0 %v686_v2  ;;  %v700_v13 = vld [vmem:[%s957_s3 + $0x40] ss:$8 sps:$4 sm:$0xff]   ;;  %v704_v16 = vld [vmem:[%s957_s3 + $0x24] ss:$8 sps:$4 sm:$0xff]   ;;  %v709_v19 = vld [vmem:[%s957_s3 + $0x10] ss:$8 sps:$4 sm:$0xff]  }
   0x7   :  { %654 = vmatprep.subr.bf16.mxu0 %v737_v0  ;;  %v706_v17 = vld [vmem:[%s957_s3 + $0x20] ss:$8 sps:$4 sm:$0xff]   ;;  %v710_v20 = vld [vmem:[%s957_s3 + $0x4] ss:$8 sps:$4 sm:$0xff]   ;;  %v713_v23 = vld [vmem:[%s959_s5 + $0x78] sm:$0xff]   ;;  %v139_v54 = vsub.s32 0, %v138_v53 }
   0x8   :  { %230 = vmatpush1.bf16.msra.mxu1 %v694_v7  ;;  %v712_v21 = vld [vmem:[%s957_s3] ss:$8 sps:$4 sm:$0xff]   ;;  %v714_v24 = vld [vmem:[%s959_s5 + $0x38] sm:$0xff]   ;;  %v715_v25 = vld [vmem:[%s959_s5 + $0x70] sm:$0xff]   ;;  %v143_v56 = vsub.s32 1, %v138_v53 }
   0x9   :  { %231 = vmatprep.subr.bf16.mxu1 %v695_v8  ;;  %v716_v26 = vld [vmem:[%s959_s5 + $0x30] sm:$0xff]   ;;  %v717_v27 = vld [vmem:[%s959_s5 + $0x68] sm:$0xff]   ;;  %v719_v29 = vld [vmem:[%s959_s5 + $0x60] sm:$0xff]  }
   0xa   :  { %655 = vmatpush3.bf16.msra.mxu0 %v687_v5  ;;  %v718_v28 = vld [vmem:[%s959_s5 + $0x28] sm:$0xff]   ;;  %v720_v30 = vld [vmem:[%s959_s5 + $0x20] sm:$0xff]   ;;  %v721_v31 = vld [vmem:[%s959_s5 + $0x58] sm:$0xff]  }
   0xb   :  { %656 = vmatprep.subr.bf16.mxu0 %v737_v0  ;;  %v722_v32 = vld [vmem:[%s959_s5 + $0x18] sm:$0xff]   ;;  %v723_v33 = vld [vmem:[%s959_s5 + $0x50] sm:$0xff]   ;;  %v566_v35 = vld [vmem:[%s960_s2] ss:$0 sm:$0xff] }
   0xc   :  { %232 = vmatpush1.bf16.msra.mxu1 %v697_v10  ;;  %v724_v34 = vld [vmem:[%s959_s5 + $0x10] sm:$0xff]   ;;  %v725_v43 = vld [vmem:[%s959_s5 + $0x48] sm:$0xff]   ;;  %v727_v45 = vld [vmem:[%s959_s5 + $0x40] sm:$0xff]  }
   0xd   :  { %233 = vmatprep.subr.bf16.mxu1 %v698_v11  ;;  %v726_v44 = vld [vmem:[%s959_s5 + $0x8] sm:$0xff]   ;;  %v728_v46 = vld [vmem:[%s959_s5] sm:$0xff]   ;;  %v729_v47 = vld [vmem:[%s961_s7 + $0x38] sm:$0xff]  }
   0xe   :  { %657 = vmatpush3.bf16.msra.mxu0 %v688_v9  ;;  %v730_v48 = vld [vmem:[%s961_s7 + $0x30] sm:$0xff]   ;;  %v731_v49 = vld [vmem:[%s961_s7 + $0x28] sm:$0xff]   ;;  %v732_v50 = vld [vmem:[%s961_s7 + $0x20] sm:$0xff]  }
   0xf   :  { %619 = vmatprep.subr.bf16.mxu0 %v713_v23  ;;  %v733_v51 = vld [vmem:[%s961_s7 + $0x18] sm:$0xff]   ;;  %v135_v55 = vld [vmem:[%s962_s4] sm:$0x3]  ;;  %v734_v6 = vld [vmem:[%s961_s7 + $0x10] sm:$0xff]  }
  0x10   :  { %234 = vmatpush1.bf16.msra.mxu1 %v700_v13  ;;  %v140_v57 = vrot.slane %v135_v55, %v139_v54  ;;  %v144_v58 = vrot.slane %v135_v55, %v143_v56  ;;  %v735_v7 = vld [vmem:[%s961_s7 + $0x8] sm:$0xff]   ;;  %v736_v8 = vld [vmem:[%s961_s7] sm:$0xff]  }
  0x11   :  { %659 = vmatmul.mubr.msk.bf16.vlgmr.msra.gmra.mxu0 %vm73_vm1, %v33_v12  ;;  %235 = vmatprep.subr.bf16.mxu1 %v701_v14  ;;  %v588_v10 = vld [vmem:[%s963_s6] ss:$0 sm:$0xff] }
  0x12   :  { %620 = vmatpush3.bf16.msra.mxu0 %v714_v24 }
  0x13   :  { %621 = vmatprep.subr.bf16.mxu0 %v715_v25 }
  0x14   :  { %236 = vmatpush1.bf16.msra.mxu1 %v703_v15 }
  0x15   :  { %237 = vmatprep.subr.bf16.mxu1 %v704_v16 }
  0x16   :  { %622 = vmatpush3.bf16.msra.mxu0 %v716_v26 }
  0x17   :  { %623 = vmatprep.subr.bf16.mxu0 %v717_v27 }
  0x18   :  { %238 = vmatpush1.bf16.msra.mxu1 %v706_v17 }
  0x19   :  { %239 = vmatprep.subr.bf16.mxu1 %v707_v18 }
  0x1a   :  { %624 = vmatpush3.bf16.msra.mxu0 %v718_v28 }
  0x1b   :  { %625 = vmatprep.subr.bf16.mxu0 %v719_v29 }
  0x1c   :  { %240 = vmatpush1.bf16.msra.mxu1 %v709_v19 }
  0x1d   :  { %241 = vmatprep.subr.bf16.mxu1 %v710_v20 }
  0x1e   :  { %626 = vmatpush3.bf16.msra.mxu0 %v720_v30 }
  0x1f   :  { %627 = vmatprep.subr.bf16.mxu0 %v721_v31 }
  0x20   :  { %242 = vmatpush1.bf16.msra.mxu1 %v712_v21 }
  0x21   :  { %662 = vmatprep.subr.bf16.mxu1 %v737_v0 }
  0x22   :  { %628 = vmatpush3.bf16.msra.mxu0 %v722_v32 }
  0x23   :  { %629 = vmatprep.subr.bf16.mxu0 %v723_v33 }
  0x26   :  { %630 = vmatpush3.bf16.msra.mxu0 %v724_v34 }
  0x27   :  { %631 = vmatprep.subr.bf16.mxu0 %v725_v43 }
  0x2a   :  { %632 = vmatpush3.bf16.msra.mxu0 %v726_v44 }
  0x2b   :  { %633 = vmatprep.subr.bf16.mxu0 %v727_v45 }
  0x2e   :  { %634 = vmatpush3.bf16.msra.mxu0 %v728_v46 }
  0xd1   :  { %v111_v36 = vpop.f32.mrf.mxu0 }
  0xd2   :  { %v112_v37 = vadd.f32 %v566_v35, %v111_v36 }
  0xd3   :  { %v660_v38 = vpop.f32.mrf.mxu0 }
  0xd4   :  { %v117_v39 = vmax.f32 %v112_v37, 0.0 }
  0xd5   :  { %v114_v40 = vpop.f32.mrf.mxu0 }
  0xd6   :  { %v118_v41 = vpack.c.bf16 %v117_v39, %v117_v39 }
  0xd7   :  { %v661_v42 = vpop.f32.mrf.mxu0 }
  0xd8   :  { %260 = vmatmul.mubr.bf16.vlgmr.msra.gmra.mxu1 %v118_v41 }
  0xd9   :  { %678 = vmatprep.mubr.msk.bf16.mxu1 %vm738_vm0, %v737_v0  ;;  %663 = vmatpush3.bf16.msra.mxu1 %v729_v47 }
  0xda   :  { %664 = vmatprep.subr.bf16.mxu1 %v737_v0 }
  0xdd   :  { %665 = vmatpush3.bf16.msra.mxu1 %v730_v48 }
  0xde   :  { %666 = vmatprep.subr.bf16.mxu1 %v737_v0 }
  0xe1   :  { %667 = vmatpush3.bf16.msra.mxu1 %v731_v49 }
  0xe2   :  { %668 = vmatprep.subr.bf16.mxu1 %v737_v0 }
  0xe5   :  { %669 = vmatpush3.bf16.msra.mxu1 %v732_v50 }
  0xe6   :  { %670 = vmatprep.subr.bf16.mxu1 %v737_v0 }
  0xe9   :  { %671 = vmatpush3.bf16.msra.mxu1 %v733_v51 }
  0xea   :  { %672 = vmatprep.subr.bf16.mxu1 %v737_v0 }
  0xed   :  { %673 = vmatpush3.bf16.msra.mxu1 %v734_v6 }
  0xee   :  { %674 = vmatprep.subr.bf16.mxu1 %v737_v0 }
  0xf1   :  { %675 = vmatpush3.bf16.msra.mxu1 %v735_v7 }
  0xf2   :  { %676 = vmatprep.subr.bf16.mxu1 %v737_v0  ;;  %v605_v0 = vld [vmem:[%s964_s8] ss:$0 sm:$0xff] }
  0xf5   :  { %677 = vmatpush3.bf16.msra.mxu1 %v736_v8 }
 0x198   :  { %v261_v59 = vpop.f32.mrf.mxu1 }
 0x199   :  { %v262_v60 = vadd.f32 %v261_v59, %v140_v57 }
 0x19a   :  { %v263_v61 = vpop.f32.mrf.mxu1 }
 0x19b   :  { %v264_v62 = vadd.f32 %v263_v61, %v144_v58  ;;  %v268_v63 = vmax.f32 %v262_v60, 0.0 }
 0x19c   :  { %v265_v1 = vpop.f32.mrf.mxu1 }
 0x19d   :  { %v269_v2 = vmax.f32 %v264_v62, 0.0  ;;  %v270_v5 = vpack.c.bf16 %v268_v63, %v268_v63 }
 0x19e   :  { %v266_v3 = vpop.f32.mrf.mxu1 }
 0x19f   :  { %v271_v4 = vpack.c.bf16 %v269_v2, %v269_v2 }
 0x1a1   :  { %439 = vmatprep.mubr.bf16.mxu0 %v271_v4 }
 0x1a2   :  { %440 = vmatmul.mubr.bf16.vlgmr.msra.gmra.mxu0 %v270_v5 }
 0x262   :  { %v635_v9 = vpop.f32.mrf.mxu0 }
 0x264   :  { %v636_v11 = vpop.f32.mrf.mxu0 }
 0x265   :  { %v637_v12 = vadd.f32 %v636_v11, %v635_v9 }
 0x266   :  { %v638_v13 = vpop.f32.mrf.mxu0 }
 0x267   :  { %v442_v14 = vadd.f32 %v637_v12, %v588_v10 }
 0x268   :  { %v639_v15 = vpop.f32.mrf.mxu0 }
 0x269   :  { %v447_v16 = vmax.f32 %v442_v14, 0.0 }
 0x26b   :  { %v448_v17 = vpack.c.bf16 %v447_v16, %v447_v16 }
 0x26d   :  { %679 = vmatmul.mubr.bf16.vlgmr.msra.gmra.mxu1 %v448_v17 }
 0x32d   :  { %v554_v18 = vpop.f32.mrf.mxu1 }
 0x32e   :  { %v555_v19 = vadd.f32 %v605_v0, %v554_v18 }
 0x32f   :  { %v680_v20 = vpop.f32.mrf.mxu1 }
 0x330   :  { %561 = vst.msk [vmem:[%s965_s9] sm:$0xff] %vm560_vm2, %v555_v19 }
 0x331   :  { %v557_v21 = vpop.f32.mrf.mxu1 }
 0x333   :  { %v681_v22 = vpop.f32.mrf.mxu1 }

</bundles_post_ra>
